<compile_context>
chip_gen: v7x
topology: tpu7x:2x2x1
jax: 0.10.0
libtpu: 0.0.40
codegen_flags: <defaults>
</compile_context>

<pallas_src>
import jax
import jax.numpy as jnp
from jax import lax
from jax.experimental import pallas as pl
from jax.experimental.pallas import tpu as pltpu

EPS = 1e-6


def _uniform_hash(counter_u32, seed_u32):
    """Counter-based uniform [0,1) floats from a 32-bit mixing hash.

    Pure jnp integer ops (mul / xor / shift), so it lowers on Mosaic and in
    interpret mode alike.  `counter_u32` must be unique per element.
    """
    x = counter_u32 + seed_u32 * jnp.uint32(0x9E3779B9)
    x = x ^ (x >> 16)
    x = x * jnp.uint32(0x7FEB352D)
    x = x ^ (x >> 15)
    x = x * jnp.uint32(0x846CA68B)
    x = x ^ (x >> 16)
    # top 24 bits -> exact float32 in [0, 2^24), scale to [0, 1)
    top = (x >> 8).astype(jnp.int32)
    return top.astype(jnp.float32) * jnp.float32(1.0 / 16777216.0)


def _edge_sampling_kernel(seed_ref, x_rows_ref, x_full_ref, adj_ref, probs_ref):
    bt, tm, _ = x_rows_ref.shape                      # (Bt, TM, D)
    n = x_full_ref.shape[1]                           # full node count N

    seed_u32 = seed_ref[0].astype(jnp.uint32)
    row_off = pl.program_id(1) * tm                   # global row offset
    b_off = pl.program_id(0) * bt                     # global batch offset

    col_i32 = lax.broadcasted_iota(jnp.int32, (tm, n), 1)
    row_i32 = lax.broadcasted_iota(jnp.int32, (tm, n), 0)

    for bi in range(bt):                              # static unroll; bt is small
        xr = x_rows_ref[bi].astype(jnp.float32)       # (TM, D) query rows
        xf = x_full_ref[bi].astype(jnp.float32)       # (N , D) all nodes

        # ---- pairwise L2 distance via Gram matrix (MXU, no x.T feed) --------
        gram = lax.dot_general(xr, xf, (((1,), (1,)), ((), ())),
                               preferred_element_type=jnp.float32)   # (TM, N)
        sq_r = jnp.sum(xr * xr, axis=-1, keepdims=True)              # (TM, 1)
        sq_c = jnp.sum(xf * xf, axis=-1, keepdims=True)              # (N , 1)
        sq_dist = jnp.maximum(sq_r + sq_c.T - 2.0 * gram, 0.0)
        dist = jnp.sqrt(sq_dist)                                     # (TM, N)

        # ---- probs = softmax(-dist, axis=-1) ---------------------------------
        neg = -dist
        m = jnp.max(neg, axis=-1, keepdims=True)
        e = jnp.exp(neg - m)
        inv = 1.0 / jnp.sum(e, axis=-1, keepdims=True)   # TM divides, not TM*N
        probs = e * inv

        # ---- hard Gumbel sample: one_hot(argmax_j(log(probs+eps) + g_j)) ----
        # (softmax and /tau are monotone -> same argmax as the full
        #  gumbel-softmax, so the soft pass is dead compute for the forward.)
        b_glob = (b_off + bi).astype(jnp.uint32)
        flat = ((b_glob * jnp.uint32(n)
                 + (row_i32 + row_off).astype(jnp.uint32)) * jnp.uint32(n)
                + col_i32.astype(jnp.uint32))            # unique per element
        u = jnp.clip(_uniform_hash(flat, seed_u32), EPS, 1.0 - EPS)
        g = -jnp.log(-jnp.log(u))                                    # Gumbel(0,1)
        score = jnp.log(probs + EPS) + g
        smax = jnp.max(score, axis=-1, keepdims=True)
        cand = jnp.where(score >= smax, col_i32, n)      # non-max -> n
        arg = jnp.min(cand, axis=-1, keepdims=True)      # first max (torch ties)
        adj_ref[bi] = (col_i32 == arg).astype(jnp.float32)
        probs_ref[bi] = probs


def edge_sampling(x, tau, temperature=None, *, seed=0,
                  block_rows=None, block_batch=None):
    """Forward pass of EdgeSampling.

    x: (B, N, D) float32 node embeddings.  Returns (adj, probs), both (B, N, N).
    `tau` / `temperature` are accepted for API parity; the hard (straight-
    through) forward value is independent of both.  Vary `seed` per call to
    draw fresh Gumbel noise (generated in-kernel, no HBM noise array).
    """
    del tau, temperature
    B, N, D = x.shape

    # Tile selection: fuse batch elements when N is small (tile economics),
    # tile rows when N is large (VMEM stays O(rows * N)).
    if block_rows is None:
        block_rows = N if N <= 256 else (256 if N <= 1024 else 128)
    tm = min(block_rows, N)
    if block_batch is None:
        block_batch = 1 if tm < N else min(B, max(1, 512 // max(tm, 1)), 8)
    bt = max(1, min(block_batch, B))

    grid = (pl.cdiv(B, bt), pl.cdiv(N, tm))
    seed_arr = jnp.asarray([seed], dtype=jnp.int32)

    kernel = pl.pallas_call(
        _edge_sampling_kernel,
        out_shape=(
            jax.ShapeDtypeStruct((B, N, N), jnp.float32),   # hard adjacency
            jax.ShapeDtypeStruct((B, N, N), jnp.float32),   # edge probabilities
        ),
        grid=grid,
        in_specs=[
            pl.BlockSpec((1,), lambda b, r: (0,),
                         memory_space=pltpu.MemorySpace.SMEM),     # seed
            pl.BlockSpec((bt, tm, D), lambda b, r: (b, r, 0)),     # row block
            pl.BlockSpec((bt, N, D), lambda b, r: (b, 0, 0)),      # all nodes
        ],
        out_specs=(
            pl.BlockSpec((bt, tm, N), lambda b, r: (b, r, 0)),
            pl.BlockSpec((bt, tm, N), lambda b, r: (b, r, 0)),
        ),
        compiler_params=pltpu.CompilerParams(
            dimension_semantics=("parallel", "parallel")),
    )
    return kernel(seed_arr, x, x)


if __name__ == "__main__":
    key = jax.random.PRNGKey(0)
    B, N, D = 2, 16, 32
    x = jax.random.normal(key, (B, N, D), dtype=jnp.float32)
    tau = 0.5
    temperature = 1.0  # unused by forward, same as the PyTorch module

    adj, probs = edge_sampling(x, tau, temperature, seed=1234)
    jax.block_until_ready((adj, probs))

    # Sanity: adjacency rows are exact one-hots, probs rows sum to 1.
    assert adj.shape == (B, N, N) and probs.shape == (B, N, N)
    assert bool(jnp.all((adj == 0.0) | (adj == 1.0)))
    assert bool(jnp.allclose(jnp.sum(adj, axis=-1), 1.0))
    assert bool(jnp.allclose(jnp.sum(probs, axis=-1), 1.0, atol=1e-5))

    # Noise-independent part (probs) matches a pure-JAX reference.
    sq = jnp.sum(x * x, axis=-1)
    gram = jnp.einsum("bnd,bmd->bnm", x, x, precision=lax.Precision.HIGHEST)
    d2 = jnp.maximum(sq[:, :, None] + sq[:, None, :] - 2.0 * gram, 0.0)
    ref_probs = jax.nn.softmax(-jnp.sqrt(d2), axis=-1)
    assert bool(jnp.allclose(probs, ref_probs, atol=2e-3))

    print("KERNEL_OK")
</pallas_src>

<mosaic_0001>
module attributes {stable_mosaic.version = 11 : i64} {
  func.func @_edge_sampling_kernel(%arg0: i32, %arg1: i32, %arg2: memref<1xi32, #tpu.memory_space<smem>>, %arg3: memref<2x16x32xf32, #tpu.memory_space<vmem>>, %arg4: memref<2x16x32xf32, #tpu.memory_space<vmem>>, %arg5: memref<2x16x16xf32, #tpu.memory_space<vmem>>, %arg6: memref<2x16x16xf32, #tpu.memory_space<vmem>>) attributes {dimension_semantics = [#tpu.dimension_semantics<parallel>, #tpu.dimension_semantics<parallel>], iteration_bounds = array<i64: 1, 1>, scalar_prefetch = 0 : i64, scratch_operands = 0 : i64, tpu.core_type = #tpu.core_type<tc>, window_params = [{transform_indices = @transform_0, window_bounds = array<i64: 1>}, {transform_indices = @transform_1, window_bounds = array<i64: 2, 16, 32>}, {transform_indices = @transform_2, window_bounds = array<i64: 2, 16, 32>}, {transform_indices = @transform_3, window_bounds = array<i64: 2, 16, 16>}, {transform_indices = @transform_4, window_bounds = array<i64: 2, 16, 16>}]} {
    %c0 = arith.constant 0 : index
    %0 = memref.load %arg2[%c0] : memref<1xi32, #tpu.memory_space<smem>>
    %c16_i32 = arith.constant 16 : i32
    %1 = arith.muli %arg1, %c16_i32 : i32
    %c2_i32 = arith.constant 2 : i32
    %2 = arith.muli %arg0, %c2_i32 : i32
    %3 = tpu.iota {dimensions = array<i32: 1>} : vector<16x16xi32>
    %4 = tpu.iota {dimensions = array<i32: 0>} : vector<16x16xi32>
    %c0_0 = arith.constant 0 : index
    %c0_1 = arith.constant 0 : index
    %c0_2 = arith.constant 0 : index
    %5 = vector.load %arg3[%c0_0, %c0_1, %c0_2] : memref<2x16x32xf32, #tpu.memory_space<vmem>>, vector<1x16x32xf32>
    %6 = vector.shape_cast %5 : vector<1x16x32xf32> to vector<16x32xf32>
    %c0_3 = arith.constant 0 : index
    %c0_4 = arith.constant 0 : index
    %c0_5 = arith.constant 0 : index
    %7 = vector.load %arg4[%c0_3, %c0_4, %c0_5] : memref<2x16x32xf32, #tpu.memory_space<vmem>>, vector<1x16x32xf32>
    %8 = vector.shape_cast %7 : vector<1x16x32xf32> to vector<16x32xf32>
    %cst = arith.constant dense<0.000000e+00> : vector<16x16xf32>
    %9 = tpu.matmul %6, %8, %cst {dimension_numbers = #tpu.dot_dimension_numbers<[1], [1], [0], [0], [0, 0, 1, 0], [], []>} : vector<16x32xf32>, vector<16x32xf32>, vector<16x16xf32> -> vector<16x16xf32>
    %10 = arith.mulf %6, %6 : vector<16x32xf32>
    %cst_6 = arith.constant dense<0.000000e+00> : vector<16xf32>
    %11 = vector.multi_reduction <add>, %10, %cst_6 [1] : vector<16x32xf32> to vector<16xf32>
    %12 = vector.shape_cast %11 : vector<16xf32> to vector<16x1xf32>
    %13 = arith.mulf %8, %8 : vector<16x32xf32>
    %cst_7 = arith.constant dense<0.000000e+00> : vector<16xf32>
    %14 = vector.multi_reduction <add>, %13, %cst_7 [1] : vector<16x32xf32> to vector<16xf32>
    %15 = vector.shape_cast %14 : vector<16xf32> to vector<16x1xf32>
    %16 = tpu.transpose %15, [1, 0] : vector<16x1xf32> -> vector<1x16xf32>
    %17 = vector.broadcast %12 : vector<16x1xf32> to vector<16x16xf32>
    %18 = vector.broadcast %16 : vector<1x16xf32> to vector<16x16xf32>
    %19 = arith.addf %17, %18 : vector<16x16xf32>
    %cst_8 = arith.constant 2.000000e+00 : f32
    %20 = vector.broadcast %cst_8 : f32 to vector<16x16xf32>
    %21 = arith.mulf %20, %9 : vector<16x16xf32>
    %22 = arith.subf %19, %21 : vector<16x16xf32>
    %cst_9 = arith.constant 0.000000e+00 : f32
    %23 = vector.broadcast %cst_9 : f32 to vector<16x16xf32>
    %24 = arith.maximumf %22, %23 : vector<16x16xf32>
    %25 = math.sqrt %24 : vector<16x16xf32>
    %cst_10 = arith.constant 0.000000e+00 : f32
    %26 = vector.broadcast %cst_10 : f32 to vector<16x16xf32>
    %27 = arith.subf %26, %25 : vector<16x16xf32>
    %cst_11 = arith.constant dense<0xFF800000> : vector<16xf32>
    %28 = vector.multi_reduction <maximumf>, %27, %cst_11 [1] : vector<16x16xf32> to vector<16xf32>
    %29 = vector.shape_cast %28 : vector<16xf32> to vector<16x1xf32>
    %30 = vector.broadcast %29 : vector<16x1xf32> to vector<16x16xf32>
    %31 = arith.subf %27, %30 : vector<16x16xf32>
    %32 = math.exp %31 : vector<16x16xf32>
    %cst_12 = arith.constant dense<0.000000e+00> : vector<16xf32>
    %33 = vector.multi_reduction <add>, %32, %cst_12 [1] : vector<16x16xf32> to vector<16xf32>
    %34 = vector.shape_cast %33 : vector<16xf32> to vector<16x1xf32>
    %cst_13 = arith.constant 1.000000e+00 : f32
    %35 = vector.broadcast %cst_13 : f32 to vector<16x1xf32>
    %36 = arith.divf %35, %34 : vector<16x1xf32>
    %37 = vector.broadcast %36 : vector<16x1xf32> to vector<16x16xf32>
    %38 = arith.mulf %32, %37 : vector<16x16xf32>
    %c0_i32 = arith.constant 0 : i32
    %39 = arith.addi %2, %c0_i32 : i32
    %c16_i32_14 = arith.constant 16 : i32
    %40 = arith.muli %39, %c16_i32_14 : i32
    %41 = vector.broadcast %1 : i32 to vector<16x16xi32>
    %42 = arith.addi %4, %41 : vector<16x16xi32>
    %43 = vector.broadcast %40 : i32 to vector<16x16xi32>
    %44 = arith.addi %43, %42 : vector<16x16xi32>
    %c16_i32_15 = arith.constant 16 : i32
    %45 = vector.broadcast %c16_i32_15 : i32 to vector<16x16xi32>
    %46 = arith.muli %44, %45 : vector<16x16xi32>
    %47 = arith.addi %46, %3 : vector<16x16xi32>
    %c-1640531527_i32 = arith.constant -1640531527 : i32
    %48 = arith.muli %0, %c-1640531527_i32 : i32
    %49 = vector.broadcast %48 : i32 to vector<16x16xi32>
    %50 = arith.addi %47, %49 : vector<16x16xi32>
    %c16_i32_16 = arith.constant 16 : i32
    %51 = vector.broadcast %c16_i32_16 : i32 to vector<16x16xi32>
    %52 = arith.shrui %50, %51 : vector<16x16xi32>
    %53 = arith.xori %50, %52 : vector<16x16xi32>
    %c2146121005_i32 = arith.constant 2146121005 : i32
    %54 = vector.broadcast %c2146121005_i32 : i32 to vector<16x16xi32>
    %55 = arith.muli %53, %54 : vector<16x16xi32>
    %c15_i32 = arith.constant 15 : i32
    %56 = vector.broadcast %c15_i32 : i32 to vector<16x16xi32>
    %57 = arith.shrui %55, %56 : vector<16x16xi32>
    %58 = arith.xori %55, %57 : vector<16x16xi32>
    %c-2073254261_i32 = arith.constant -2073254261 : i32
    %59 = vector.broadcast %c-2073254261_i32 : i32 to vector<16x16xi32>
    %60 = arith.muli %58, %59 : vector<16x16xi32>
    %c16_i32_17 = arith.constant 16 : i32
    %61 = vector.broadcast %c16_i32_17 : i32 to vector<16x16xi32>
    %62 = arith.shrui %60, %61 : vector<16x16xi32>
    %63 = arith.xori %60, %62 : vector<16x16xi32>
    %c8_i32 = arith.constant 8 : i32
    %64 = vector.broadcast %c8_i32 : i32 to vector<16x16xi32>
    %65 = arith.shrui %63, %64 : vector<16x16xi32>
    %66 = arith.sitofp %65 : vector<16x16xi32> to vector<16x16xf32>
    %cst_18 = arith.constant 5.96046448E-8 : f32
    %67 = vector.broadcast %cst_18 : f32 to vector<16x16xf32>
    %68 = arith.mulf %66, %67 : vector<16x16xf32>
    %cst_19 = arith.constant 9.99999997E-7 : f32
    %cst_20 = arith.constant 0.999998986 : f32
    %69 = vector.broadcast %cst_19 : f32 to vector<16x16xf32>
    %70 = arith.maximumf %69, %68 : vector<16x16xf32>
    %71 = vector.broadcast %cst_20 : f32 to vector<16x16xf32>
    %72 = arith.minimumf %71, %70 : vector<16x16xf32>
    %73 = math.log %72 : vector<16x16xf32>
    %cst_21 = arith.constant 0.000000e+00 : f32
    %74 = vector.broadcast %cst_21 : f32 to vector<16x16xf32>
    %75 = arith.subf %74, %73 : vector<16x16xf32>
    %76 = math.log %75 : vector<16x16xf32>
    %cst_22 = arith.constant 0.000000e+00 : f32
    %77 = vector.broadcast %cst_22 : f32 to vector<16x16xf32>
    %78 = arith.subf %77, %76 : vector<16x16xf32>
    %cst_23 = arith.constant 9.99999997E-7 : f32
    %79 = vector.broadcast %cst_23 : f32 to vector<16x16xf32>
    %80 = arith.addf %38, %79 : vector<16x16xf32>
    %81 = math.log %80 : vector<16x16xf32>
    %82 = arith.addf %81, %78 : vector<16x16xf32>
    %cst_24 = arith.constant dense<0xFF800000> : vector<16xf32>
    %83 = vector.multi_reduction <maximumf>, %82, %cst_24 [1] : vector<16x16xf32> to vector<16xf32>
    %84 = vector.shape_cast %83 : vector<16xf32> to vector<16x1xf32>
    %85 = vector.broadcast %84 : vector<16x1xf32> to vector<16x16xf32>
    %86 = arith.cmpf oge, %82, %85 : vector<16x16xf32>
    %c16_i32_25 = arith.constant 16 : i32
    %87 = vector.broadcast %c16_i32_25 : i32 to vector<16x16xi32>
    %88 = arith.select %86, %3, %87 : vector<16x16xi1>, vector<16x16xi32>
    %cst_26 = arith.constant dense<2147483647> : vector<16xi32>
    %89 = vector.multi_reduction <minsi>, %88, %cst_26 [1] : vector<16x16xi32> to vector<16xi32>
    %90 = vector.shape_cast %89 : vector<16xi32> to vector<16x1xi32>
    %91 = vector.broadcast %90 : vector<16x1xi32> to vector<16x16xi32>
    %92 = arith.cmpi eq, %3, %91 : vector<16x16xi32>
    %93 = arith.extui %92 : vector<16x16xi1> to vector<16x16xi32>
    %94 = arith.sitofp %93 : vector<16x16xi32> to vector<16x16xf32>
    %c0_27 = arith.constant 0 : index
    %c0_28 = arith.constant 0 : index
    %c0_29 = arith.constant 0 : index
    %95 = vector.load %arg5[%c0_27, %c0_28, %c0_29] : memref<2x16x16xf32, #tpu.memory_space<vmem>>, vector<1x16x16xf32>
    %96 = vector.shape_cast %95 : vector<1x16x16xf32> to vector<16x16xf32>
    %97 = vector.shape_cast %94 : vector<16x16xf32> to vector<1x16x16xf32>
    tpu.vector_store %arg5[%c0_27, %c0_28, %c0_29], %97 {strides = array<i32>} : memref<2x16x16xf32, #tpu.memory_space<vmem>>, vector<1x16x16xf32>,
    %c0_30 = arith.constant 0 : index
    %c0_31 = arith.constant 0 : index
    %c0_32 = arith.constant 0 : index
    %98 = vector.load %arg6[%c0_30, %c0_31, %c0_32] : memref<2x16x16xf32, #tpu.memory_space<vmem>>, vector<1x16x16xf32>
    %99 = vector.shape_cast %98 : vector<1x16x16xf32> to vector<16x16xf32>
    %100 = vector.shape_cast %38 : vector<16x16xf32> to vector<1x16x16xf32>
    tpu.vector_store %arg6[%c0_30, %c0_31, %c0_32], %100 {strides = array<i32>} : memref<2x16x16xf32, #tpu.memory_space<vmem>>, vector<1x16x16xf32>,
    %c1 = arith.constant 1 : index
    %c0_33 = arith.constant 0 : index
    %c0_34 = arith.constant 0 : index
    %101 = vector.load %arg3[%c1, %c0_33, %c0_34] : memref<2x16x32xf32, #tpu.memory_space<vmem>>, vector<1x16x32xf32>
    %102 = vector.shape_cast %101 : vector<1x16x32xf32> to vector<16x32xf32>
    %c1_35 = arith.constant 1 : index
    %c0_36 = arith.constant 0 : index
    %c0_37 = arith.constant 0 : index
    %103 = vector.load %arg4[%c1_35, %c0_36, %c0_37] : memref<2x16x32xf32, #tpu.memory_space<vmem>>, vector<1x16x32xf32>
    %104 = vector.shape_cast %103 : vector<1x16x32xf32> to vector<16x32xf32>
    %cst_38 = arith.constant dense<0.000000e+00> : vector<16x16xf32>
    %105 = tpu.matmul %102, %104, %cst_38 {dimension_numbers = #tpu.dot_dimension_numbers<[1], [1], [0], [0], [0, 0, 1, 0], [], []>} : vector<16x32xf32>, vector<16x32xf32>, vector<16x16xf32> -> vector<16x16xf32>
    %106 = arith.mulf %102, %102 : vector<16x32xf32>
    %cst_39 = arith.constant dense<0.000000e+00> : vector<16xf32>
    %107 = vector.multi_reduction <add>, %106, %cst_39 [1] : vector<16x32xf32> to vector<16xf32>
    %108 = vector.shape_cast %107 : vector<16xf32> to vector<16x1xf32>
    %109 = arith.mulf %104, %104 : vector<16x32xf32>
    %cst_40 = arith.constant dense<0.000000e+00> : vector<16xf32>
    %110 = vector.multi_reduction <add>, %109, %cst_40 [1] : vector<16x32xf32> to vector<16xf32>
    %111 = vector.shape_cast %110 : vector<16xf32> to vector<16x1xf32>
    %112 = tpu.transpose %111, [1, 0] : vector<16x1xf32> -> vector<1x16xf32>
    %113 = vector.broadcast %108 : vector<16x1xf32> to vector<16x16xf32>
    %114 = vector.broadcast %112 : vector<1x16xf32> to vector<16x16xf32>
    %115 = arith.addf %113, %114 : vector<16x16xf32>
    %cst_41 = arith.constant 2.000000e+00 : f32
    %116 = vector.broadcast %cst_41 : f32 to vector<16x16xf32>
    %117 = arith.mulf %116, %105 : vector<16x16xf32>
    %118 = arith.subf %115, %117 : vector<16x16xf32>
    %cst_42 = arith.constant 0.000000e+00 : f32
    %119 = vector.broadcast %cst_42 : f32 to vector<16x16xf32>
    %120 = arith.maximumf %118, %119 : vector<16x16xf32>
    %121 = math.sqrt %120 : vector<16x16xf32>
    %cst_43 = arith.constant 0.000000e+00 : f32
    %122 = vector.broadcast %cst_43 : f32 to vector<16x16xf32>
    %123 = arith.subf %122, %121 : vector<16x16xf32>
    %cst_44 = arith.constant dense<0xFF800000> : vector<16xf32>
    %124 = vector.multi_reduction <maximumf>, %123, %cst_44 [1] : vector<16x16xf32> to vector<16xf32>
    %125 = vector.shape_cast %124 : vector<16xf32> to vector<16x1xf32>
    %126 = vector.broadcast %125 : vector<16x1xf32> to vector<16x16xf32>
    %127 = arith.subf %123, %126 : vector<16x16xf32>
    %128 = math.exp %127 : vector<16x16xf32>
    %cst_45 = arith.constant dense<0.000000e+00> : vector<16xf32>
    %129 = vector.multi_reduction <add>, %128, %cst_45 [1] : vector<16x16xf32> to vector<16xf32>
    %130 = vector.shape_cast %129 : vector<16xf32> to vector<16x1xf32>
    %cst_46 = arith.constant 1.000000e+00 : f32
    %131 = vector.broadcast %cst_46 : f32 to vector<16x1xf32>
    %132 = arith.divf %131, %130 : vector<16x1xf32>
    %133 = vector.broadcast %132 : vector<16x1xf32> to vector<16x16xf32>
    %134 = arith.mulf %128, %133 : vector<16x16xf32>
    %c1_i32 = arith.constant 1 : i32
    %135 = arith.addi %2, %c1_i32 : i32
    %c16_i32_47 = arith.constant 16 : i32
    %136 = arith.muli %135, %c16_i32_47 : i32
    %137 = vector.broadcast %1 : i32 to vector<16x16xi32>
    %138 = arith.addi %4, %137 : vector<16x16xi32>
    %139 = vector.broadcast %136 : i32 to vector<16x16xi32>
    %140 = arith.addi %139, %138 : vector<16x16xi32>
    %c16_i32_48 = arith.constant 16 : i32
    %141 = vector.broadcast %c16_i32_48 : i32 to vector<16x16xi32>
    %142 = arith.muli %140, %141 : vector<16x16xi32>
    %143 = arith.addi %142, %3 : vector<16x16xi32>
    %c-1640531527_i32_49 = arith.constant -1640531527 : i32
    %144 = arith.muli %0, %c-1640531527_i32_49 : i32
    %145 = vector.broadcast %144 : i32 to vector<16x16xi32>
    %146 = arith.addi %143, %145 : vector<16x16xi32>
    %c16_i32_50 = arith.constant 16 : i32
    %147 = vector.broadcast %c16_i32_50 : i32 to vector<16x16xi32>
    %148 = arith.shrui %146, %147 : vector<16x16xi32>
    %149 = arith.xori %146, %148 : vector<16x16xi32>
    %c2146121005_i32_51 = arith.constant 2146121005 : i32
    %150 = vector.broadcast %c2146121005_i32_51 : i32 to vector<16x16xi32>
    %151 = arith.muli %149, %150 : vector<16x16xi32>
    %c15_i32_52 = arith.constant 15 : i32
    %152 = vector.broadcast %c15_i32_52 : i32 to vector<16x16xi32>
    %153 = arith.shrui %151, %152 : vector<16x16xi32>
    %154 = arith.xori %151, %153 : vector<16x16xi32>
    %c-2073254261_i32_53 = arith.constant -2073254261 : i32
    %155 = vector.broadcast %c-2073254261_i32_53 : i32 to vector<16x16xi32>
    %156 = arith.muli %154, %155 : vector<16x16xi32>
    %c16_i32_54 = arith.constant 16 : i32
    %157 = vector.broadcast %c16_i32_54 : i32 to vector<16x16xi32>
    %158 = arith.shrui %156, %157 : vector<16x16xi32>
    %159 = arith.xori %156, %158 : vector<16x16xi32>
    %c8_i32_55 = arith.constant 8 : i32
    %160 = vector.broadcast %c8_i32_55 : i32 to vector<16x16xi32>
    %161 = arith.shrui %159, %160 : vector<16x16xi32>
    %162 = arith.sitofp %161 : vector<16x16xi32> to vector<16x16xf32>
    %cst_56 = arith.constant 5.96046448E-8 : f32
    %163 = vector.broadcast %cst_56 : f32 to vector<16x16xf32>
    %164 = arith.mulf %162, %163 : vector<16x16xf32>
    %cst_57 = arith.constant 9.99999997E-7 : f32
    %cst_58 = arith.constant 0.999998986 : f32
    %165 = vector.broadcast %cst_57 : f32 to vector<16x16xf32>
    %166 = arith.maximumf %165, %164 : vector<16x16xf32>
    %167 = vector.broadcast %cst_58 : f32 to vector<16x16xf32>
    %168 = arith.minimumf %167, %166 : vector<16x16xf32>
    %169 = math.log %168 : vector<16x16xf32>
    %cst_59 = arith.constant 0.000000e+00 : f32
    %170 = vector.broadcast %cst_59 : f32 to vector<16x16xf32>
    %171 = arith.subf %170, %169 : vector<16x16xf32>
    %172 = math.log %171 : vector<16x16xf32>
    %cst_60 = arith.constant 0.000000e+00 : f32
    %173 = vector.broadcast %cst_60 : f32 to vector<16x16xf32>
    %174 = arith.subf %173, %172 : vector<16x16xf32>
    %cst_61 = arith.constant 9.99999997E-7 : f32
    %175 = vector.broadcast %cst_61 : f32 to vector<16x16xf32>
    %176 = arith.addf %134, %175 : vector<16x16xf32>
    %177 = math.log %176 : vector<16x16xf32>
    %178 = arith.addf %177, %174 : vector<16x16xf32>
    %cst_62 = arith.constant dense<0xFF800000> : vector<16xf32>
    %179 = vector.multi_reduction <maximumf>, %178, %cst_62 [1] : vector<16x16xf32> to vector<16xf32>
    %180 = vector.shape_cast %179 : vector<16xf32> to vector<16x1xf32>
    %181 = vector.broadcast %180 : vector<16x1xf32> to vector<16x16xf32>
    %182 = arith.cmpf oge, %178, %181 : vector<16x16xf32>
    %c16_i32_63 = arith.constant 16 : i32
    %183 = vector.broadcast %c16_i32_63 : i32 to vector<16x16xi32>
    %184 = arith.select %182, %3, %183 : vector<16x16xi1>, vector<16x16xi32>
    %cst_64 = arith.constant dense<2147483647> : vector<16xi32>
    %185 = vector.multi_reduction <minsi>, %184, %cst_64 [1] : vector<16x16xi32> to vector<16xi32>
    %186 = vector.shape_cast %185 : vector<16xi32> to vector<16x1xi32>
    %187 = vector.broadcast %186 : vector<16x1xi32> to vector<16x16xi32>
    %188 = arith.cmpi eq, %3, %187 : vector<16x16xi32>
    %189 = arith.extui %188 : vector<16x16xi1> to vector<16x16xi32>
    %190 = arith.sitofp %189 : vector<16x16xi32> to vector<16x16xf32>
    %c1_65 = arith.constant 1 : index
    %c0_66 = arith.constant 0 : index
    %c0_67 = arith.constant 0 : index
    %191 = vector.load %arg5[%c1_65, %c0_66, %c0_67] : memref<2x16x16xf32, #tpu.memory_space<vmem>>, vector<1x16x16xf32>
    %192 = vector.shape_cast %191 : vector<1x16x16xf32> to vector<16x16xf32>
    %193 = vector.shape_cast %190 : vector<16x16xf32> to vector<1x16x16xf32>
    tpu.vector_store %arg5[%c1_65, %c0_66, %c0_67], %193 {strides = array<i32>} : memref<2x16x16xf32, #tpu.memory_space<vmem>>, vector<1x16x16xf32>,
    %c1_68 = arith.constant 1 : index
    %c0_69 = arith.constant 0 : index
    %c0_70 = arith.constant 0 : index
    %194 = vector.load %arg6[%c1_68, %c0_69, %c0_70] : memref<2x16x16xf32, #tpu.memory_space<vmem>>, vector<1x16x16xf32>
    %195 = vector.shape_cast %194 : vector<1x16x16xf32> to vector<16x16xf32>
    %196 = vector.shape_cast %134 : vector<16x16xf32> to vector<1x16x16xf32>
    tpu.vector_store %arg6[%c1_68, %c0_69, %c0_70], %196 {strides = array<i32>} : memref<2x16x16xf32, #tpu.memory_space<vmem>>, vector<1x16x16xf32>,
    return
  }
  func.func @transform_0(%arg0: i32, %arg1: i32) -> i32 {
    %c0_i32 = arith.constant 0 : i32
    %c0_i32_0 = arith.constant 0 : i32
    return %c0_i32 : i32
  }
  func.func @transform_1(%arg0: i32, %arg1: i32) -> (i32, i32, i32) {
    %c0_i32 = arith.constant 0 : i32
    %c0_i32_0 = arith.constant 0 : i32
    return %arg0, %arg1, %c0_i32 : i32, i32, i32
  }
  func.func @transform_2(%arg0: i32, %arg1: i32) -> (i32, i32, i32) {
    %c0_i32 = arith.constant 0 : i32
    %c0_i32_0 = arith.constant 0 : i32
    %c0_i32_1 = arith.constant 0 : i32
    return %arg0, %c0_i32, %c0_i32_0 : i32, i32, i32
  }
  func.func @transform_3(%arg0: i32, %arg1: i32) -> (i32, i32, i32) {
    %c0_i32 = arith.constant 0 : i32
    %c0_i32_0 = arith.constant 0 : i32
    return %arg0, %arg1, %c0_i32 : i32, i32, i32
  }
  func.func @transform_4(%arg0: i32, %arg1: i32) -> (i32, i32, i32) {
    %c0_i32 = arith.constant 0 : i32
    %c0_i32_0 = arith.constant 0 : i32
    return %arg0, %arg1, %c0_i32 : i32, i32, i32
  }
}

</mosaic_0001>

<bundles_post_ra>
// kernel: tpu_custom_call.1
= control target key start
LH: loop header
LB: loop body
LE: loop exit
PB: predicated region body
PF: predicated region fallthrough
CT: control target
= control target key end

     0   :  { %11 = vsyncpa [#allocation4], 0  ;;  %s1075_s0 = inlined_call_operand.<no memory space> [shape: s32[1], index: 0, kind: input, shape index: {}]   ;;  %s1076_s1 = inlined_call_operand.hbm [shape: f32[2,16,32], index: 1, kind: input, shape index: {}]   ;;  %s1077_s2 = inlined_call_operand.hbm [shape: f32[2,16,32], index: 2, kind: input, shape index: {}]   ;;  %s1078_s3 = inlined_call_operand.hbm [shape: f32[2,16,16], index: 3, kind: output, shape index: {0}]   ;;  %s1079_s4 = inlined_call_operand.hbm [shape: f32[2,16,16], index: 4, kind: output, shape index: {1}]  }
   0x1   :  { %12 = vsyncpa [#allocation7], 0 }
   0x2   :  { %13 = vsyncpa [#allocation5], 0 }
   0x3   :  { %14 = vsyncpa [#allocation10], 0  ;;  %s892_s15 = smov [#allocation3]   ;;  %s796_s19 = scalar_lea.hbm %s1076_s1, 512 }
   0x4   :  { %s22_s16 = sshll.u32 %s892_s15, 4  ;;  %p797_p0 = scmp.ne.s32.totalorder %s1076_s1, %s796_s19  ;;  %s23_s16 = int_to_ptr.vmem [resolvable:$true] %s22_s16 }
   0x5   :  { %p800_p1 = scmp.lt.u32.totalorder %s796_s19, %s1076_s1 }
   0x7   :  { %p802_p2 = pnand %p800_p1, %p797_p0 }
   0x9   :  { %805 = shalt.err (!%p802_p2)
}
   0xa   :  { %s806_s24 = scalar_lea.vmem %s23_s16, 512  ;;  %p811_p4 = scmp.lt.s32.totalorder %s23_s16, %s23_s16 }
   0xb   :  { %p807_p3 = scmp.ne.s32.totalorder %s23_s16, %s806_s24  ;;  %p812_p5 = scmp.lt.s32.totalorder %s806_s24, %s806_s24 }
   0xd   :  { %p813_p6 = por %p812_p5, %p811_p4 }
   0xf   :  { %p814_p7 = pnand %p813_p6, %p807_p3 }
  0x11   :  { %817 = shalt.err (!%p814_p7)
}
  0x12   :  { %s893_s25 = smov 128   ;;  %s894_s26 = smov 8  }
  0x13   :  { %28 = dma.hbm_to_vmem [thread:$0]  %s1076_s1, 512, %s23_s16, [#allocation4], %s893_s25, %s893_s25, %s894_s26  }
  0x14   :  { %s895_s29 = smov [#allocation6]   ;;  %s818_s7 = scalar_lea.hbm %s1077_s2, 512 }
  0x15   :  { %s34_s30 = sshll.u32 %s895_s29, 4  ;;  %p819_p8 = scmp.ne.s32.totalorder %s1077_s2, %s818_s7  ;;  %s35_s30 = int_to_ptr.vmem [resolvable:$true] %s34_s30 }
  0x16   :  { %p822_p9 = scmp.lt.u32.totalorder %s818_s7, %s1077_s2 }
  0x18   :  { %p824_p10 = pnand %p822_p9, %p819_p8 }
  0x1a   :  { %827 = shalt.err (!%p824_p10)
}
  0x1b   :  { %s828_s12 = scalar_lea.vmem %s35_s30, 512  ;;  %p833_p12 = scmp.lt.s32.totalorder %s35_s30, %s35_s30 }
  0x1c   :  { %p829_p11 = scmp.ne.s32.totalorder %s35_s30, %s828_s12  ;;  %p834_p13 = scmp.lt.s32.totalorder %s828_s12, %s828_s12 }
  0x1e   :  { %p835_p0 = por %p834_p13, %p833_p12 }
  0x20   :  { %p836_p1 = pnand %p835_p0, %p829_p11 }
  0x22   :  { %839 = shalt.err (!%p836_p1)
}
  0x23   :  { %40 = dma.hbm_to_vmem [thread:$0]  %s1077_s2, 512, %s35_s30, [#allocation7], %s893_s25, %s893_s25, %s894_s26  }
  0x24   :  { %884 = dma.done.wait [#allocation4], 512  }
  0x25   :  { %885 = vsyncadd [#allocation4], 4294966784 }
  0x26   :  { %886 = dma.done.wait [#allocation7], 512  }
  0x27   :  { %887 = vsyncadd [#allocation7], 4294966784  ;;  %vm59_vm0 = vcmask 261120   ;;  %v57_v1 = vld [vmem:[#allocation6] sm:$0xff]  ;;  %v58_v2 = vld [vmem:[#allocation6 + $0x8] sm:$0xff]  ;;  %v50_v35 = vlaneseq  ;;  %vm223_vm6 = vcmask 130048  }
  0x28   :  { %vm956_vm1 = vmpackc.low %vm59_vm0, %vm59_vm0  ;;  %v363_v3 = vld [vmem:[#allocation6 + $0x10] sm:$0xff]  ;;  %v155_v4 = vmul.f32 %v57_v1, %v57_v1  ;;  %v156_v5 = vmul.f32 %v58_v2, %v58_v2  ;;  %v364_v7 = vld [vmem:[#allocation6 + $0x18] sm:$0xff]  ;;  %v729_v8 = vpack.c.bf16 %v58_v2, %v57_v1  ;;  %s259_s15 = smul.u32 2654435769, %s1075_s0  ;;  %s896_s0 = smov [#allocation9]  }
  0x29   :  { %v460_v6 = vmul.f32 %v363_v3, %v363_v3  ;;  %v55_v9 = vld [vmem:[#allocation3] sm:$0xff]  ;;  %v461_v10 = vmul.f32 %v364_v7, %v364_v7  ;;  %v735_v11 = vpack.c.bf16 %v364_v7, %v363_v3  ;;  %v360_v12 = vld [vmem:[#allocation3 + $0x10] sm:$0xff]  ;;  %v56_v15 = vld [vmem:[#allocation3 + $0x8] sm:$0xff]  ;;  %v981_v37 = vshrl.u32 %v50_v35, 7  ;;  %s678_s16 = sshll.u32 %s896_s0, 4  ;;  %s679_s16 = int_to_ptr.vmem [resolvable:$true] %s678_s16 }
  0x2a   :  { %719 = vmatprep.mubr.msk.f32.mxu0 %vm59_vm0, %v55_v9  ;;  %v157_v13 = vsel %vm59_vm0, %v155_v4, 0.0  ;;  %v160_v14 = vsel %vm59_vm0, %v156_v5, 0.0  ;;  %731 = vmatprep.subr.msk.bf16.mxu0 %vm956_vm1, %v729_v8  ;;  %v148_v18 = vmul.f32 %v56_v15, %v56_v15  ;;  %v147_v19 = vmul.f32 %v55_v9, %v55_v9  ;;  %v361_v20 = vld [vmem:[#allocation3 + $0x18] sm:$0xff]  ;;  %s840_s17 = scalar_lea.vmem %s679_s16, 512  ;;  %p845_p3 = scmp.lt.s32.totalorder %s679_s16, %s679_s16 }
  0x2b   :  { %726 = vmatprep.mubr.msk.f32.mxu1 %vm59_vm0, %v360_v12  ;;  %158 = vadd.xlane.f32.xlu0 %v157_v13  ;;  %v462_v16 = vsel %vm59_vm0, %v460_v6, 0.0  ;;  %v465_v17 = vsel %vm59_vm0, %v461_v10, 0.0  ;;  %v453_v22 = vmul.f32 %v361_v20, %v361_v20  ;;  %v452_v23 = vmul.f32 %v360_v12, %v360_v12  ;;  %p841_p2 = scmp.ne.s32.totalorder %s679_s16, %s840_s17  ;;  %p846_p4 = scmp.lt.s32.totalorder %s840_s17, %s840_s17 }
  0x2c   :  { %161 = vadd.xlane.f32.xlu1 %v160_v14  ;;  %734 = vmatpush3.bf16.xpose.msk.msra.mxu0 %vm956_vm1, %v729_v8  ;;  %v152_v21 = vsel %vm59_vm0, %v148_v18, 0.0  ;;  %v149_v24 = vsel %vm59_vm0, %v147_v19, 0.0  ;;  %v197_v40 = vsub.s32 0, %v981_v37 }
  0x2d   :  { %737 = vmatprep.subr.msk.bf16.mxu1 %vm956_vm1, %v735_v11  ;;  %v457_v25 = vsel %vm59_vm0, %v453_v22, 0.0  ;;  %v454_v26 = vsel %vm59_vm0, %v452_v23, 0.0  ;;  %p847_p5 = por %p846_p4, %p845_p3 }
  0x2e   :  { %740 = vmatpush3.bf16.xpose.msk.msra.mxu1 %vm956_vm1, %v735_v11 }
  0x2f   :  { %463 = vadd.xlane.f32.xlu0 %v462_v16  ;;  %p848_p6 = pnand %p847_p5, %p841_p2 }
  0x30   :  { %466 = vadd.xlane.f32.xlu1 %v465_v17 }
  0x33   :  { %720 = vmatmul.mubr.msk.f32.vlgmr.msra.gmra.mrb[0].mxu0 %vm59_vm0, %v56_v15  ;;  %150 = vadd.xlane.f32.xlu0 %v149_v24 }
  0x34   :  { %153 = vadd.xlane.f32.xlu1 %v152_v21 }
  0x35   :  { %727 = vmatmul.mubr.msk.f32.vlgmr.msra.gmra.mrb[0].mxu1 %vm59_vm0, %v361_v20 }
  0x37   :  { %455 = vadd.xlane.f32.xlu0 %v454_v26 }
  0x38   :  { %458 = vadd.xlane.f32.xlu1 %v457_v25 }
  0xb8   :  { %v159_v27 = vpop.xlane.xlu0 %158 }
  0xb9   :  { %v162_v28 = vpop.xlane.xlu1 %161  ;;  %163 = vxpose.xlu0.b32.start [1/2] (short) (narrow) %v159_v27, 8 }
  0xbc   :  { %v464_v29 = vpop.xlane.xlu0 %463 }
  0xbd   :  { %468 = vxpose.xlu1.b32.start [1/2] (short) (narrow) %v464_v29, 8  ;;  %164 = vxpose.xlu0.b32.end [2/2] (short) (narrow) %v162_v28, 8  ;;  %v467_v30 = vpop.xlane.xlu1 %466 }
  0xc0   :  { %v151_v36 = vpop.xlane.xlu0 %150 }
  0xc1   :  { %469 = vxpose.xlu1.b32.end [2/2] (short) (narrow) %v467_v30, 8  ;;  %v154_v38 = vpop.xlane.xlu1 %153 }
  0xc4   :  { %v456_v39 = vpop.xlane.xlu0 %455 }
  0xc5   :  { %v459_v41 = vpop.xlane.xlu1 %458 }
 0x106   :  { %v721_v31 = vpop.f32.mrb[0].mxu0 }
 0x107   :  { %v138_v32 = vpop.f32.mrb[1].mxu0  ;;  %v202_v44 = vmul.f32 2.0, %v721_v31 }
 0x108   :  { %v728_v33 = vpop.f32.mrb[0].mxu1  ;;  %v201_v45 = vmul.f32 2.0, %v138_v32 }
 0x109   :  { %v443_v34 = vpop.f32.mrb[1].mxu1  ;;  %v507_v48 = vmul.f32 2.0, %v728_v33 }
 0x10a   :  { %v506_v53 = vmul.f32 2.0, %v443_v34 }
 0x139   :  { %v179_v42 = vpop.trf.xlu0 }
 0x13a   :  { %v198_v43 = vrot.slane %v179_v42, %v197_v40 }
 0x13c   :  { %v199_v46 = vadd.f32 %v198_v43, %v151_v36  ;;  %v200_v47 = vadd.f32 %v198_v43, %v154_v38 }
 0x13d   :  { %v484_v49 = vpop.trf.xlu1 }
 0x13e   :  { %v204_v50 = vsub.f32 %v200_v47, %v202_v44  ;;  %v203_v51 = vsub.f32 %v199_v46, %v201_v45  ;;  %v503_v52 = vrot.slane %v484_v49, %v197_v40  ;;  %v1006_v49 = vand.u32 127, %v50_v35 }
 0x140   :  { %v206_v54 = vmax.f32 %v204_v50, 0.0  ;;  %v205_v55 = vmax.f32 %v203_v51, 0.0  ;;  %v504_v56 = vadd.f32 %v503_v52, %v456_v39  ;;  %v505_v57 = vadd.f32 %v503_v52, %v459_v41 }
 0x141   :  { %v255_v50 = vmul.u32 16, %v981_v37  ;;  %v555_v51 = vadd.s32 16, %v981_v37 }
 0x142   :  { %748 = vrsqrt.f32 %v205_v55  ;;  %v509_v58 = vsub.f32 %v505_v57, %v507_v48  ;;  %v508_v59 = vsub.f32 %v504_v56, %v506_v53  ;;  %vm209_vm2 = vcmp.eq.f32.partialorder %v205_v55, inf }
 0x143   :  { %750 = vrsqrt.f32 %v206_v54  ;;  %v212_v2 = vand.u32 2147483648, %v205_v55  ;;  %vm216_vm3 = vcmp.eq.f32.partialorder %v206_v54, inf  ;;  %v219_v3 = vand.u32 2147483648, %v206_v54 }
 0x144   :  { %v511_v60 = vmax.f32 %v509_v58, 0.0  ;;  %v510_v61 = vmax.f32 %v508_v59, 0.0  ;;  %vm211_vm4 = vcmp.eq.f32.partialorder %v205_v55, 0.0  ;;  %vm218_vm5 = vcmp.eq.f32.partialorder %v206_v54, 0.0 }
 0x145   :  { %v54_v48 = vadd.s32 8, %v981_v37  ;;  %v260_v58 = vstv %s259_s15 }
 0x146   :  { %752 = vrsqrt.f32 %v510_v61  ;;  %vm521_vm7 = vcmp.eq.f32.partialorder %v511_v60, inf  ;;  %vm514_vm8 = vcmp.eq.f32.partialorder %v510_v61, inf  ;;  %v517_v14 = vand.u32 2147483648, %v510_v61 }
 0x147   :  { %754 = vrsqrt.f32 %v511_v60  ;;  %v524_v16 = vand.u32 2147483648, %v511_v60  ;;  %vm516_vm9 = vcmp.eq.f32.partialorder %v510_v61, 0.0  ;;  %vm523_vm10 = vcmp.eq.f32.partialorder %v511_v60, 0.0 }
 0x148   :  { %v256_v52 = vmul.u32 16, %v54_v48  ;;  %v556_v53 = vadd.s32 16, %v54_v48 }
 0x14a   :  { %v258_v56 = vadd.s32 %v256_v52, %v1006_v49  ;;  %v558_v57 = vmul.u32 16, %v556_v53 }
 0x14c   :  { %v749_v62 = vpop.eup %748 }
 0x14d   :  { %v751_v63 = vpop.eup %750  ;;  %v208_v0 = vmul.f32 %v749_v62, %v205_v55 }
 0x14e   :  { %v215_v1 = vmul.f32 %v751_v63, %v206_v54 }
 0x14f   :  { %v210_v4 = vsel %vm209_vm2, %v205_v55, %v208_v0  ;;  %v557_v55 = vmul.u32 16, %v555_v51 }
 0x150   :  { %v753_v5 = vpop.eup %752  ;;  %v217_v6 = vsel %vm216_vm3, %v206_v54, %v215_v1  ;;  %v213_v7 = vsel %vm211_vm4, %v212_v2, %v210_v4  ;;  %v257_v54 = vadd.s32 %v255_v50, %v1006_v49 }
 0x151   :  { %v755_v8 = vpop.eup %754  ;;  %v220_v9 = vsel %vm218_vm5, %v219_v3, %v217_v6  ;;  %v221_v10 = vsub.f32 0.0, %v213_v7  ;;  %v513_v11 = vmul.f32 %v753_v5, %v510_v61  ;;  %v559_v35 = vadd.s32 %v557_v55, %v1006_v49 }
 0x152   :  { %v222_v12 = vsub.f32 0.0, %v220_v9  ;;  %v520_v13 = vmul.f32 %v755_v8, %v511_v60  ;;  %v261_v59 = vadd.s32 %v260_v58, %v257_v54 }
 0x153   :  { %v224_v15 = vsel %vm223_vm6, %v221_v10, -inf  ;;  %v515_v17 = vsel %vm514_vm8, %v510_v61, %v513_v11  ;;  %v262_v61 = vadd.s32 %v260_v58, %v258_v56  ;;  %v561_v62 = vadd.s32 %v559_v35, %v260_v58 }
 0x154   :  { %v227_v18 = vsel %vm223_vm6, %v222_v12, -inf  ;;  %225 = vmax.xlane.f32.xlu0 %v224_v15  ;;  %v522_v19 = vsel %vm521_vm7, %v511_v60, %v520_v13  ;;  %v518_v20 = vsel %vm516_vm9, %v517_v14, %v515_v17  ;;  %v560_v60 = vadd.s32 %v558_v57, %v1006_v49 }
 0x155   :  { %228 = vmax.xlane.f32.xlu1 %v227_v18  ;;  %v525_v21 = vsel %vm523_vm10, %v524_v16, %v522_v19  ;;  %v526_v22 = vsub.f32 0.0, %v518_v20  ;;  %v263_v37 = vshrl.u32 %v261_v59, 16  ;;  %v264_v63 = vshrl.u32 %v262_v61, 16 }
 0x156   :  { %v527_v23 = vsub.f32 0.0, %v525_v21  ;;  %v562_v0 = vadd.s32 %v560_v60, %v260_v58  ;;  %v563_v2 = vshrl.u32 %v561_v62, 16 }
 0x157   :  { %v528_v24 = vsel %vm223_vm6, %v526_v22, -inf  ;;  %v265_v1 = vxor.u32 %v263_v37, %v261_v59  ;;  %v266_v3 = vxor.u32 %v264_v63, %v262_v61 }
 0x158   :  { %v531_v25 = vsel %vm223_vm6, %v527_v23, -inf  ;;  %529 = vmax.xlane.f32.xlu0 %v528_v24  ;;  %v564_v4 = vshrl.u32 %v562_v0, 16  ;;  %v565_v6 = vxor.u32 %v563_v2, %v561_v62 }
 0x159   :  { %532 = vmax.xlane.f32.xlu1 %v531_v25  ;;  %v267_v5 = vmul.u32 2146121005, %v265_v1  ;;  %v268_v7 = vmul.u32 2146121005, %v266_v3 }
 0x15a   :  { %v566_v8 = vxor.u32 %v564_v4, %v562_v0 }
 0x15b   :  { %v269_v9 = vshrl.u32 %v267_v5, 15  ;;  %v270_v11 = vshrl.u32 %v268_v7, 15 }
 0x15d   :  { %v271_v13 = vxor.u32 %v269_v9, %v267_v5  ;;  %v272_v15 = vxor.u32 %v270_v11, %v268_v7 }
 0x15f   :  { %v273_v17 = vmul.u32 2221713035, %v271_v13  ;;  %v274_v19 = vmul.u32 2221713035, %v272_v15 }
 0x161   :  { %v275_v21 = vshrl.u32 %v273_v17, 16 }
 0x163   :  { %v277_v25 = vxor.u32 %v275_v21, %v273_v17 }
 0x1e1   :  { %v226_v26 = vpop.xlane.xlu0 %225 }
 0x1e2   :  { %v229_v27 = vpop.xlane.xlu1 %228  ;;  %v230_v28 = vsub.f32 %v221_v10, %v226_v26  ;;  %v567_v10 = vmul.u32 2146121005, %v565_v6 }
 0x1e3   :  { %v231_v29 = vsub.f32 %v222_v12, %v229_v27  ;;  %v568_v12 = vmul.u32 2146121005, %v566_v8 }
 0x1e4   :  { %v232_v30 = vmul.f32 1.442695, %v230_v28  ;;  %v569_v14 = vshrl.u32 %v567_v10, 15 }
 0x1e5   :  { %v234_v31 = vmul.f32 1.442695, %v231_v29  ;;  %v530_v32 = vpop.xlane.xlu0 %529  ;;  %v570_v16 = vshrl.u32 %v568_v12, 15  ;;  %v279_v29 = vshrl.u32 %v277_v25, 8 }
 0x1e6   :  { %756 = vpow2.f32 %v232_v30  ;;  %v533_v33 = vpop.xlane.xlu1 %532  ;;  %v534_v34 = vsub.f32 %v526_v22, %v530_v32  ;;  %v571_v18 = vxor.u32 %v569_v14, %v567_v10 }
 0x1e7   :  { %758 = vpow2.f32 %v234_v31  ;;  %v535_v36 = vsub.f32 %v527_v23, %v533_v33  ;;  %v572_v20 = vxor.u32 %v570_v16, %v568_v12  ;;  %v276_v23 = vshrl.u32 %v274_v19, 16 }
 0x1e8   :  { %v536_v38 = vmul.f32 1.442695, %v534_v34  ;;  %v573_v22 = vmul.u32 2221713035, %v571_v18  ;;  %v281_v33 = vcvt.s32.f32 %v279_v29 }
 0x1e9   :  { %v538_v39 = vmul.f32 1.442695, %v535_v36  ;;  %v574_v24 = vmul.u32 2221713035, %v572_v20  ;;  %v278_v27 = vxor.u32 %v276_v23, %v274_v19 }
 0x1ea   :  { %760 = vpow2.f32 %v536_v38  ;;  %v575_v26 = vshrl.u32 %v573_v22, 16 }
 0x1eb   :  { %762 = vpow2.f32 %v538_v39  ;;  %v576_v28 = vshrl.u32 %v574_v24, 16  ;;  %v280_v31 = vshrl.u32 %v278_v27, 8  ;;  %v283_v39 = vmul.f32 5.9604645e-08, %v281_v33 }
 0x1ec   :  { %v577_v30 = vxor.u32 %v575_v26, %v573_v22 }
 0x1ed   :  { %v578_v32 = vxor.u32 %v576_v28, %v574_v24  ;;  %v282_v36 = vcvt.s32.f32 %v280_v31 }
 0x1ee   :  { %v579_v34 = vshrl.u32 %v577_v30, 8 }
 0x1ef   :  { %v580_v38 = vshrl.u32 %v578_v32, 8 }
 0x1f0   :  { %v988_v40 = vpop.eup %756 }
 0x1f1   :  { %v990_v41 = vpop.eup %758  ;;  %v236_v42 = vsel %vm223_vm6, %v988_v40, 0.0 }
 0x1f2   :  { %v239_v43 = vsel %vm223_vm6, %v990_v41, 0.0  ;;  %237 = vadd.xlane.f32.xlu0 %v236_v42  ;;  %v581_v42 = vcvt.s32.f32 %v579_v34 }
 0x1f3   :  { %240 = vadd.xlane.f32.xlu1 %v239_v43  ;;  %v284_v43 = vmul.f32 5.9604645e-08, %v282_v36 }
 0x1f4   :  { %v996_v44 = vpop.eup %760  ;;  %v583_v48 = vmul.f32 5.9604645e-08, %v581_v42 }
 0x1f5   :  { %v998_v45 = vpop.eup %762  ;;  %v540_v46 = vsel %vm223_vm6, %v996_v44, 0.0  ;;  %v286_v50 = vmax.f32 %v284_v43, 1e-06 }
 0x1f6   :  { %v543_v47 = vsel %vm223_vm6, %v998_v45, 0.0  ;;  %541 = vadd.xlane.f32.xlu0 %v540_v46  ;;  %v582_v46 = vcvt.s32.f32 %v580_v38  ;;  %v585_v53 = vmax.f32 %v583_v48, 1e-06 }
 0x1f7   :  { %544 = vadd.xlane.f32.xlu1 %v543_v47  ;;  %v285_v47 = vmax.f32 %v283_v39, 1e-06  ;;  %v288_v54 = vmin.f32 %v286_v50, 0.999999 }
 0x1f8   :  { %v584_v51 = vmul.f32 5.9604645e-08, %v582_v46  ;;  %v587_v56 = vmin.f32 %v585_v53, 0.999999 }
 0x1f9   :  { %v287_v52 = vmin.f32 %v285_v47, 0.999999 }
 0x1fa   :  { %v586_v55 = vmax.f32 %v584_v51, 1e-06 }
 0x1fb   :  { %764 = vlog2.f32 %v287_v52 }
 0x1fc   :  { %766 = vlog2.f32 %v288_v54  ;;  %v588_v57 = vmin.f32 %v586_v55, 0.999999 }
 0x1fd   :  { %768 = vlog2.f32 %v587_v56 }
 0x1fe   :  { %770 = vlog2.f32 %v588_v57 }
 0x205   :  { %v765_v58 = vpop.eup %764 }
 0x206   :  { %v767_v35 = vpop.eup %766  ;;  %v290_v60 = vmul.f32 0.6931472, %v765_v58 }
 0x207   :  { %v769_v61 = vpop.eup %768  ;;  %v292_v62 = vmul.f32 0.6931472, %v767_v35 }
 0x208   :  { %v771_v63 = vpop.eup %770  ;;  %v293_v1 = vsub.f32 0.0, %v290_v60  ;;  %v590_v2 = vmul.f32 0.6931472, %v769_v61 }
 0x209   :  { %v294_v4 = vsub.f32 0.0, %v292_v62  ;;  %v592_v5 = vmul.f32 0.6931472, %v771_v63 }
 0x20a   :  { %v593_v6 = vsub.f32 0.0, %v590_v2 }
 0x20b   :  { %v594_v7 = vsub.f32 0.0, %v592_v5 }
 0x27f   :  { %v238_v59 = vpop.xlane.xlu0 %237 }
 0x280   :  { %v241_v37 = vpop.xlane.xlu1 %240  ;;  %772 = vrcp.f32 %v238_v59 }
 0x281   :  { %774 = vrcp.f32 %v241_v37 }
 0x283   :  { %v542_v0 = vpop.xlane.xlu0 %541 }
 0x284   :  { %v545_v3 = vpop.xlane.xlu1 %544  ;;  %776 = vrcp.f32 %v542_v0 }
 0x285   :  { %778 = vrcp.f32 %v545_v3 }
 0x286   :  { %780 = vlog2.f32 %v293_v1 }
 0x287   :  { %782 = vlog2.f32 %v294_v4 }
 0x288   :  { %784 = vlog2.f32 %v593_v6 }
 0x289   :  { %786 = vlog2.f32 %v594_v7 }
 0x28a   :  { %v773_v8 = vpop.eup %772 }
 0x28b   :  { %v775_v9 = vpop.eup %774  ;;  %v246_v10 = vmul.f32 %v773_v8, %v988_v40 }
 0x28c   :  { %v247_v11 = vmul.f32 %v775_v9, %v990_v41 }
 0x28d   :  { %v301_v12 = vadd.f32 1e-06, %v246_v10  ;;  %357 = vst.msk [vmem:[#allocation9] sm:$0xff] %vm223_vm6, %v246_v10 }
 0x28e   :  { %v777_v13 = vpop.eup %776  ;;  %v302_v14 = vadd.f32 1e-06, %v247_v11  ;;  %358 = vst.msk [vmem:[#allocation9 + $0x8] sm:$0xff] %vm223_vm6, %v247_v11 }
 0x28f   :  { %v779_v15 = vpop.eup %778  ;;  %788 = vlog2.f32 %v301_v12  ;;  %v550_v16 = vmul.f32 %v777_v13, %v996_v44 }
 0x290   :  { %790 = vlog2.f32 %v302_v14  ;;  %v551_v17 = vmul.f32 %v779_v15, %v998_v45  ;;  %v781_v18 = vpop.eup %780 }
 0x291   :  { %v601_v40 = vadd.f32 1e-06, %v550_v16  ;;  %659 = vst.msk [vmem:[#allocation9 + $0x10] sm:$0xff] %vm223_vm6, %v550_v16  ;;  %v783_v41 = vpop.eup %782  ;;  %v296_v20 = vmul.f32 0.6931472, %v781_v18 }
 0x292   :  { %v602_v19 = vadd.f32 1e-06, %v551_v17  ;;  %660 = vst.msk [vmem:[#allocation9 + $0x18] sm:$0xff] %vm223_vm6, %v551_v17  ;;  %v785_v21 = vpop.eup %784  ;;  %v298_v22 = vmul.f32 0.6931472, %v783_v41 }
 0x293   :  { %792 = vlog2.f32 %v601_v40  ;;  %v787_v23 = vpop.eup %786  ;;  %v299_v24 = vsub.f32 0.0, %v296_v20  ;;  %v596_v25 = vmul.f32 0.6931472, %v785_v21 }
 0x294   :  { %794 = vlog2.f32 %v602_v19  ;;  %v300_v26 = vsub.f32 0.0, %v298_v22  ;;  %v598_v27 = vmul.f32 0.6931472, %v787_v23 }
 0x295   :  { %v599_v31 = vsub.f32 0.0, %v596_v25 }
 0x296   :  { %v600_v34 = vsub.f32 0.0, %v598_v27 }
 0x299   :  { %v789_v44 = vpop.eup %788 }
 0x29a   :  { %v791_v45 = vpop.eup %790  ;;  %v304_v28 = vmul.f32 0.6931472, %v789_v44 }
 0x29b   :  { %v306_v29 = vmul.f32 0.6931472, %v791_v45 }
 0x29c   :  { %v307_v30 = vadd.f32 %v304_v28, %v299_v24 }
 0x29d   :  { %v793_v32 = vpop.eup %792  ;;  %v308_v33 = vadd.f32 %v306_v29, %v300_v26 }
 0x29e   :  { %v795_v36 = vpop.eup %794  ;;  %v309_v38 = vsel %vm223_vm6, %v307_v30, -inf  ;;  %v604_v39 = vmul.f32 0.6931472, %v793_v32 }
 0x29f   :  { %v312_v42 = vsel %vm223_vm6, %v308_v33, -inf  ;;  %310 = vmax.xlane.f32.xlu0 %v309_v38  ;;  %v606_v43 = vmul.f32 0.6931472, %v795_v36 }
 0x2a0   :  { %313 = vmax.xlane.f32.xlu1 %v312_v42  ;;  %v607_v46 = vadd.f32 %v604_v39, %v599_v31 }
 0x2a1   :  { %v608_v47 = vadd.f32 %v606_v43, %v600_v34 }
 0x2a2   :  { %v609_v48 = vsel %vm223_vm6, %v607_v46, -inf }
 0x2a3   :  { %v612_v50 = vsel %vm223_vm6, %v608_v47, -inf  ;;  %610 = vmax.xlane.f32.xlu0 %v609_v48 }
 0x2a4   :  { %613 = vmax.xlane.f32.xlu1 %v612_v50 }
 0x32c   :  { %v311_v51 = vpop.xlane.xlu0 %310 }
 0x32d   :  { %v314_v52 = vpop.xlane.xlu1 %313  ;;  %vm315_vm11 = vcmp.ge.f32.partialorder %v307_v30, %v311_v51 }
 0x32e   :  { %vm316_vm12 = vcmp.ge.f32.partialorder %v308_v33, %v314_v52  ;;  %v317_v53 = vsel %vm315_vm11, %v1006_v49, 16 }
 0x32f   :  { %v318_v54 = vsel %vm316_vm12, %v1006_v49, 16  ;;  %v319_v55 = vsel %vm223_vm6, %v317_v53, 2147483647 }
 0x330   :  { %v334_v56 = vsel %vm223_vm6, %v318_v54, 2147483647  ;;  %v611_v57 = vpop.xlane.xlu0 %610  ;;  %v321_v58 = vshra.s32 %v319_v55, 16  ;;  %v320_v5 = vand.u32 65535, %v319_v55 }
 0x331   :  { %v614_v35 = vpop.xlane.xlu1 %613  ;;  %vm615_vm13 = vcmp.ge.f32.partialorder %v607_v46, %v611_v57  ;;  %v336_v59 = vshra.s32 %v334_v56, 16  ;;  %v335_v6 = vand.u32 65535, %v334_v56 }
 0x332   :  { %vm616_vm14 = vcmp.ge.f32.partialorder %v608_v47, %v614_v35  ;;  %v617_v60 = vsel %vm615_vm13, %v1006_v49, 16  ;;  %v323_v61 = vcvt.s32.f32 %v321_v58  ;;  %v322_v8 = vcvt.s32.f32 %v320_v5 }
 0x333   :  { %v618_v37 = vsel %vm616_vm14, %v1006_v49, 16  ;;  %v619_v62 = vsel %vm223_vm6, %v617_v60, 2147483647  ;;  %v338_v63 = vcvt.s32.f32 %v336_v59  ;;  %v337_v11 = vcvt.s32.f32 %v335_v6 }
 0x334   :  { %v634_v0 = vsel %vm223_vm6, %v618_v37, 2147483647  ;;  %324 = vmin.xlane.f32.xlu0 %v323_v61  ;;  %v621_v1 = vshra.s32 %v619_v62, 16  ;;  %v620_v9 = vand.u32 65535, %v619_v62 }
 0x335   :  { %339 = vmin.xlane.f32.xlu1 %v338_v63  ;;  %v636_v2 = vshra.s32 %v634_v0, 16  ;;  %v635_v12 = vand.u32 65535, %v634_v0 }
 0x336   :  { %v623_v3 = vcvt.s32.f32 %v621_v1  ;;  %v622_v16 = vcvt.s32.f32 %v620_v9 }
 0x337   :  { %v638_v4 = vcvt.s32.f32 %v636_v2  ;;  %v637_v18 = vcvt.s32.f32 %v635_v12 }
 0x338   :  { %624 = vmin.xlane.f32.xlu0 %v623_v3 }
 0x339   :  { %639 = vmin.xlane.f32.xlu1 %v638_v4 }
 0x3c1   :  { %v325_v7 = vpop.xlane.xlu0 %324 }
 0x3c2   :  { %v340_v10 = vpop.xlane.xlu1 %339  ;;  %vm326_vm15 = vcmp.eq.f32.partialorder %v323_v61, %v325_v7 }
 0x3c3   :  { %vm341_vm0 = vcmp.eq.f32.partialorder %v338_v63, %v340_v10  ;;  %v327_v13 = vsel %vm326_vm15, %v322_v8, inf }
 0x3c4   :  { %v342_v14 = vsel %vm341_vm0, %v337_v11, inf  ;;  %328 = vmin.xlane.f32.xlu0 %v327_v13 }
 0x3c5   :  { %343 = vmin.xlane.f32.xlu1 %v342_v14  ;;  %v625_v15 = vpop.xlane.xlu0 %624 }
 0x3c6   :  { %v640_v17 = vpop.xlane.xlu1 %639  ;;  %vm626_vm1 = vcmp.eq.f32.partialorder %v623_v3, %v625_v15 }
 0x3c7   :  { %vm641_vm2 = vcmp.eq.f32.partialorder %v638_v4, %v640_v17  ;;  %v627_v40 = vsel %vm626_vm1, %v622_v16, inf }
 0x3c8   :  { %v642_v41 = vsel %vm641_vm2, %v637_v18, inf  ;;  %628 = vmin.xlane.f32.xlu0 %v627_v40 }
 0x3c9   :  { %643 = vmin.xlane.f32.xlu1 %v642_v41 }
 0x3ca   :  { %851 = shalt.err (!%p848_p6)
}
 0x3cb   :  { %s852_s20 = scalar_lea.hbm %s1079_s4, 512 }
 0x3cc   :  { %p853_p7 = scmp.ne.s32.totalorder %s1079_s4, %s852_s20  ;;  %p856_p8 = scmp.lt.u32.totalorder %s852_s20, %s1079_s4 }
 0x3ce   :  { %p858_p9 = pnand %p856_p8, %p853_p7 }
 0x3d0   :  { %861 = shalt.err (!%p858_p9)
}
 0x3d1   :  { %684 = dma.vmem_to_hbm [thread:$0]  %s679_s16, 512, %s1079_s4, [#allocation10], %s893_s25, %s893_s25, %s894_s26   ;;  %v331_v19 = vcvt.f32.s32 %v325_v7  ;;  %v346_v20 = vcvt.f32.s32 %v340_v10  ;;  %v631_v23 = vcvt.f32.s32 %v625_v15  ;;  %v646_v26 = vcvt.f32.s32 %v640_v17 }
 0x3d2   :  { %v897_v34 = vmov 0.0   ;;  %s898_s4 = smov [#allocation8]  }
 0x3d3   :  { %v332_v22 = vshll.u32 %v331_v19, 16  ;;  %v347_v44 = vshll.u32 %v346_v20, 16  ;;  %v632_v30 = vshll.u32 %v631_v23, 16  ;;  %v647_v33 = vshll.u32 %v646_v26, 16  ;;  %s666_s29 = sshll.u32 %s898_s4, 4  ;;  %s667_s29 = int_to_ptr.vmem [resolvable:$true] %s666_s29 }
 0x3d4   :  { %s862_s30 = scalar_lea.vmem %s667_s29, 512  ;;  %p867_p11 = scmp.lt.s32.totalorder %s667_s29, %s667_s29 }
 0x3d5   :  { %p863_p10 = scmp.ne.s32.totalorder %s667_s29, %s862_s30  ;;  %p868_p12 = scmp.lt.s32.totalorder %s862_s30, %s862_s30 }
 0x3d7   :  { %p869_p13 = por %p868_p12, %p867_p11 }
 0x3d9   :  { %p870_p0 = pnand %p869_p13, %p863_p10 }
 0x451   :  { %v329_v21 = vpop.xlane.xlu0 %328 }
 0x452   :  { %v344_v24 = vpop.xlane.xlu1 %343  ;;  %v330_v25 = vcvt.f32.s32 %v329_v21 }
 0x453   :  { %v345_v27 = vcvt.f32.s32 %v344_v24 }
 0x454   :  { %v333_v45 = vadd.s32 %v332_v22, %v330_v25 }
 0x455   :  { %v348_v28 = vadd.s32 %v347_v44, %v345_v27  ;;  %v629_v29 = vpop.xlane.xlu0 %628 }
 0x456   :  { %vm349_vm3 = vcmp.eq.s32.totalorder %v1006_v49, %v333_v45  ;;  %v644_v31 = vpop.xlane.xlu1 %643  ;;  %v630_v32 = vcvt.f32.s32 %v629_v29 }
 0x457   :  { %vm350_vm4 = vcmp.eq.s32.totalorder %v1006_v49, %v348_v28  ;;  %v699_v36 = vsel %vm349_vm3, 1.0, %v897_v34  ;;  %v645_v38 = vcvt.f32.s32 %v644_v31 }
 0x458   :  { %v700_v39 = vsel %vm350_vm4, 1.0, %v897_v34  ;;  %355 = vst.msk [vmem:[#allocation8] sm:$0xff] %vm223_vm6, %v699_v36  ;;  %v633_v42 = vadd.s32 %v632_v30, %v630_v32 }
 0x459   :  { %356 = vst.msk [vmem:[#allocation8 + $0x8] sm:$0xff] %vm223_vm6, %v700_v39  ;;  %v648_v43 = vadd.s32 %v647_v33, %v645_v38 }
 0x45a   :  { %vm649_vm5 = vcmp.eq.s32.totalorder %v1006_v49, %v633_v42 }
 0x45b   :  { %vm650_vm7 = vcmp.eq.s32.totalorder %v1006_v49, %v648_v43  ;;  %v705_v46 = vsel %vm649_vm5, 1.0, %v897_v34 }
 0x45c   :  { %v706_v47 = vsel %vm650_vm7, 1.0, %v897_v34  ;;  %656 = vst.msk [vmem:[#allocation8 + $0x10] sm:$0xff] %vm223_vm6, %v705_v46 }
 0x45d   :  { %657 = vst.msk [vmem:[#allocation8 + $0x18] sm:$0xff] %vm223_vm6, %v706_v47 }
 0x45e   :  { %873 = shalt.err (!%p870_p0)
}
 0x45f   :  { %s874_s7 = scalar_lea.hbm %s1078_s3, 512 }
 0x460   :  { %p875_p1 = scmp.ne.s32.totalorder %s1078_s3, %s874_s7  ;;  %p878_p2 = scmp.lt.u32.totalorder %s874_s7, %s1078_s3 }
 0x462   :  { %p880_p3 = pnand %p878_p2, %p875_p1 }
 0x464   :  { %883 = shalt.err (!%p880_p3)
}
 0x465   :  { %672 = dma.vmem_to_hbm [thread:$0]  %s667_s29, 512, %s1078_s3, [#allocation5], %s893_s25, %s893_s25, %s894_s26  }
 0x466   :  { %888 = dma.done.wait [#allocation5], 512  }
 0x467   :  { %889 = vsyncadd [#allocation5], 4294966784 }
 0x468   :  { %890 = dma.done.wait [#allocation10], 512  }
 0x469   :  { %891 = vsyncadd [#allocation10], 4294966784 }
 0x46a   :  { %691 = vsyncpa [#allocation4], 1 }
 0x46b   :  { %692 = vsyncpa [#allocation7], 1 }
 0x46c   :  { %693 = vsyncpa [#allocation5], 1 }
 0x46d   :  { %694 = vsyncpa [#allocation10], 1 }

</bundles_post_ra>
